<compile_context>
chip_gen: v7x
topology: tpu7x:2x2x1
jax: 0.10.0
libtpu: 0.0.40
codegen_flags: <defaults>
</compile_context>

<pallas_src>
import functools

import jax
import jax.numpy as jnp
from jax.experimental import pallas as pl
from jax.experimental.pallas import tpu as pltpu


def _round_up(x, m):
    return ((x + m - 1) // m) * m


def _cdiv(a, b):
    return (a + b - 1) // b


def _layernorm_rows(y, gamma, beta, d_true, eps=1e-6):
    """Row-wise LayerNorm over the first d_true lanes of y.

    Assumes any padded lanes of y (beyond d_true) are exactly zero, so no mask is needed:
    mean uses sum(y)/d_true, and the centered sum-of-squares gets an n_pad*mean^2 correction.
    """
    d_pad = y.shape[-1]
    inv_d = 1.0 / d_true
    mean = jnp.sum(y, axis=-1, keepdims=True) * inv_d
    centered = y - mean
    ssq = jnp.sum(centered * centered, axis=-1, keepdims=True)
    n_pad = d_pad - d_true
    if n_pad:
        ssq = ssq - n_pad * (mean * mean)   # padded lanes each contributed (-mean)^2
    y_norm = centered * jax.lax.rsqrt(ssq * inv_d + eps)
    return y_norm * gamma + beta


def mlp_fused_kernel(x_ref, w1_ref, b1_ref, w2_ref, b2_ref, g_ref, bt_ref, o_ref,
                     *, d_model_true):
    """Grid = (row_tiles,). Weights/biases have constant block indices -> fetched once."""
    x = x_ref[...]
    h = jnp.dot(x, w1_ref[...], preferred_element_type=jnp.float32)
    h = jnp.maximum(h + b1_ref[...].astype(jnp.float32), 0.0).astype(x.dtype)
    y = jnp.dot(h, w2_ref[...], preferred_element_type=jnp.float32)
    y = y + b2_ref[...].astype(jnp.float32) + x.astype(jnp.float32)   # bias + residual (f32)
    out = _layernorm_rows(y, g_ref[...].astype(jnp.float32),
                          bt_ref[...].astype(jnp.float32), d_model_true)
    o_ref[...] = out.astype(o_ref.dtype)


def mlp_tiled_kernel(x_ref, w1_ref, b1_ref, w2_ref, b2_ref, g_ref, bt_ref, o_ref, acc_ref,
                     *, d_model_true):
    """Grid = (row_tiles, d_inner_tiles). acc_ref is an f32 (tm, d_model_pad) scratch."""
    k = pl.program_id(1)

    @pl.when(k == 0)
    def _init():
        acc_ref[...] = jnp.zeros_like(acc_ref)

    x = x_ref[...]
    h = jnp.dot(x, w1_ref[...], preferred_element_type=jnp.float32)
    h = jnp.maximum(h + b1_ref[...].astype(jnp.float32), 0.0).astype(x.dtype)
    acc_ref[...] += jnp.dot(h, w2_ref[...], preferred_element_type=jnp.float32)

    @pl.when(k == pl.num_programs(1) - 1)
    def _finalize():
        y = acc_ref[...] + b2_ref[...].astype(jnp.float32) + x.astype(jnp.float32)
        out = _layernorm_rows(y, g_ref[...].astype(jnp.float32),
                              bt_ref[...].astype(jnp.float32), d_model_true)
        o_ref[...] = out.astype(o_ref.dtype)


def _vmem_budget_bytes():
    """~85% of per-core VMEM (v7x: ~54 MiB, v5e/v6e: ~108 MiB); 54 MiB fallback."""
    cap = None
    try:
        cap = getattr(pltpu.get_tpu_info(), "vmem_capacity_bytes", None)
    except Exception:
        cap = None
    if not cap:
        cap = 64 * 1024 * 1024
    return int(cap * 0.85)


def mlp_layer(x, w1, b1, w2, b2, gamma, beta, *, tm=None, tk=None, vmem_limit_bytes=None):
    """x: (batch, seq, d_model). Weights stored as (d_in, d_out). Returns x's shape/dtype."""
    batch, seq, d_model = x.shape
    d_inner = w1.shape[1]
    assert w1.shape == (d_model, d_inner)
    assert w2.shape == (d_inner, d_model)

    M = batch * seq
    x2d = x.reshape(M, d_model)

    # Lane-dense padding only where needed (multiples of 128 on the feature axes).
    d_model_pad = d_model if d_model % 128 == 0 else _round_up(d_model, 128)
    d_inner_pad = d_inner if d_inner % 128 == 0 else _round_up(d_inner, 128)

    w_bytes = jnp.dtype(w1.dtype).itemsize
    x_bytes = jnp.dtype(x.dtype).itemsize

    if vmem_limit_bytes is None:
        vmem_limit_bytes = _vmem_budget_bytes()

    # Fused (weight-resident) vs k-tiled (weight-streaming) decision.
    resident_w_bytes = 2 * d_model_pad * d_inner_pad * w_bytes
    if tk is None:
        # Budget for double-buffered resident weights plus row tiles / intermediates.
        fused = 2 * resident_w_bytes <= (vmem_limit_bytes * 3) // 5
        tk_eff = d_inner_pad if fused else next(
            t for t in (1024, 512, 256, 128) if d_inner_pad % t == 0)
    else:
        tk_eff = min(tk, d_inner_pad)
        fused = tk_eff >= d_inner_pad
    if not fused:
        assert d_inner_pad % tk_eff == 0, "tk must divide the padded d_inner"

    # Row tile: as large as the VMEM budget allows (streamed weights need tm ~ roofline:
    # ~256 on v5e, ~768-1024 on v6e, ~384-512 on v7x; bigger never hurts until VMEM binds).
    if fused:
        resident = 2 * resident_w_bytes + 2 * (2 * d_inner_pad + 3 * d_model_pad) * w_bytes
        per_row = (4 * d_model_pad * x_bytes                 # x + out tiles, double-buffered
                   + 4 * (d_inner_pad + d_model_pad))        # f32 h / y intermediates
    else:
        resident = (4 * d_model_pad * tk_eff * w_bytes       # W1/W2 tiles, double-buffered
                    + 2 * (2 * tk_eff + 3 * d_model_pad) * w_bytes)
        per_row = (4 * d_model_pad * x_bytes
                   + 4 * d_model_pad                         # f32 accumulator scratch
                   + 4 * (tk_eff + d_model_pad))             # f32 h / y intermediates
    tm_cap = max(((vmem_limit_bytes - resident) // max(per_row, 1)) // 8 * 8, 8)

    if tm is None:
        tm = 1024
    tm_eff = max(min(tm, tm_cap, _round_up(M, 8)), 8)
    # Megacore (v7x: 2 TCs share the "parallel" axis): keep >= 2 row tiles when there is work.
    if M >= 512 and _cdiv(M, tm_eff) < 2:
        tm_eff = max(_round_up(_cdiv(M, 2), 8), 8)
    n_rows = _cdiv(M, tm_eff)   # no M padding: partial last block handled by Pallas

    # Zero-pad only the feature dims that need it (padded lanes contribute exact zeros,
    # so the LayerNorm simplification above stays valid).
    def pad2d(a, rows_to, cols_to):
        r, c = a.shape
        if r == rows_to and c == cols_to:
            return a
        return jnp.pad(a, ((0, rows_to - r), (0, cols_to - c)))

    x_p = pad2d(x2d, M, d_model_pad)
    w1_p = pad2d(w1, d_model_pad, d_inner_pad)
    w2_p = pad2d(w2, d_inner_pad, d_model_pad)
    b1_p = pad2d(b1.reshape(1, d_inner), 1, d_inner_pad)
    b2_p = pad2d(b2.reshape(1, d_model), 1, d_model_pad)
    g_p = pad2d(gamma.reshape(1, d_model), 1, d_model_pad)
    bt_p = pad2d(beta.reshape(1, d_model), 1, d_model_pad)

    if fused:
        kernel = functools.partial(mlp_fused_kernel, d_model_true=d_model)
        grid = (n_rows,)
        in_specs = [
            pl.BlockSpec((tm_eff, d_model_pad), lambda i: (i, 0)),          # x row tile
            pl.BlockSpec((d_model_pad, d_inner_pad), lambda i: (0, 0)),     # W1 (fetched once)
            pl.BlockSpec((1, d_inner_pad), lambda i: (0, 0)),               # b1
            pl.BlockSpec((d_inner_pad, d_model_pad), lambda i: (0, 0)),     # W2 (fetched once)
            pl.BlockSpec((1, d_model_pad), lambda i: (0, 0)),               # b2
            pl.BlockSpec((1, d_model_pad), lambda i: (0, 0)),               # gamma
            pl.BlockSpec((1, d_model_pad), lambda i: (0, 0)),               # beta
        ]
        out_specs = pl.BlockSpec((tm_eff, d_model_pad), lambda i: (i, 0))
        scratch_shapes = []
        dims = ("parallel",)
    else:
        kernel = functools.partial(mlp_tiled_kernel, d_model_true=d_model)
        n_k = d_inner_pad // tk_eff
        grid = (n_rows, n_k)
        in_specs = [
            pl.BlockSpec((tm_eff, d_model_pad), lambda i, k: (i, 0)),       # x row tile
            pl.BlockSpec((d_model_pad, tk_eff), lambda i, k: (0, k)),       # W1[:, k-chunk]
            pl.BlockSpec((1, tk_eff), lambda i, k: (0, k)),                 # b1[k-chunk]
            pl.BlockSpec((tk_eff, d_model_pad), lambda i, k: (k, 0)),       # W2[k-chunk, :]
            pl.BlockSpec((1, d_model_pad), lambda i, k: (0, 0)),            # b2
            pl.BlockSpec((1, d_model_pad), lambda i, k: (0, 0)),            # gamma
            pl.BlockSpec((1, d_model_pad), lambda i, k: (0, 0)),            # beta
        ]
        out_specs = pl.BlockSpec((tm_eff, d_model_pad), lambda i, k: (i, 0))
        scratch_shapes = [pltpu.VMEM((tm_eff, d_model_pad), jnp.float32)]
        dims = ("parallel", "arbitrary")

    out2d = pl.pallas_call(
        kernel,
        out_shape=jax.ShapeDtypeStruct((M, d_model_pad), x.dtype),
        grid=grid,
        in_specs=in_specs,
        out_specs=out_specs,
        scratch_shapes=scratch_shapes,
        compiler_params=pltpu.CompilerParams(
            dimension_semantics=dims,
            vmem_limit_bytes=int(vmem_limit_bytes),
        ),
    )(x_p, w1_p, b1_p, w2_p, b2_p, g_p, bt_p)

    if d_model_pad != d_model:
        out2d = out2d[:, :d_model]
    return out2d.reshape(batch, seq, d_model)


def reference(x, w1, b1, w2, b2, gamma, beta):
    """Pure-JAX (f32) reference matching the PyTorch forward (LayerNorm eps=1e-6)."""
    h = jnp.maximum(x @ w1 + b1, 0.0)
    y = h @ w2 + b2 + x
    mean = jnp.mean(y, axis=-1, keepdims=True)
    var = jnp.mean((y - mean) ** 2, axis=-1, keepdims=True)
    return (y - mean) / jnp.sqrt(var + 1e-6) * gamma + beta


def _make_params(key, d_model, d_inner):
    k1, kb1, k2, kb2 = jax.random.split(key, 4)
    bound1 = 1.0 / (d_model ** 0.5)
    w1 = jax.random.uniform(k1, (d_model, d_inner), minval=-bound1, maxval=bound1,
                            dtype=jnp.float32)
    b1 = jax.random.uniform(kb1, (d_inner,), minval=-bound1, maxval=bound1, dtype=jnp.float32)
    bound2 = 1.0 / (d_inner ** 0.5)
    w2 = jax.random.uniform(k2, (d_inner, d_model), minval=-bound2, maxval=bound2,
                            dtype=jnp.float32)
    b2 = jax.random.uniform(kb2, (d_model,), minval=-bound2, maxval=bound2, dtype=jnp.float32)
    gamma = jnp.ones((d_model,), dtype=jnp.float32)   # nn.LayerNorm default init
    beta = jnp.zeros((d_model,), dtype=jnp.float32)
    return w1, b1, w2, b2, gamma, beta


if __name__ == "__main__":
    key = jax.random.PRNGKey(0)
    kx, kp, kx2, kp2 = jax.random.split(key, 4)

    # --- Fused (weights VMEM-resident) path: batch=2, seq=8, d_model=32, d_inner=64 ------
    batch, seq, d_model, d_inner = 2, 8, 32, 64
    x = jax.random.normal(kx, (batch, seq, d_model), dtype=jnp.float32)
    params = _make_params(kp, d_model, d_inner)
    ref = reference(x, *params)

    out = jax.block_until_ready(mlp_layer(x, *params))
    assert out.shape == x.shape
    assert jnp.allclose(out, ref, atol=1e-5, rtol=1e-5), (
        f"fused f32 max abs err = {jnp.max(jnp.abs(out - ref))}")

    # bf16 operands (full-rate MXU on v5e/v6e/v7x): same kernel, loose sanity tolerance.
    bf = lambda a: a.astype(jnp.bfloat16)
    out_bf16 = jax.block_until_ready(mlp_layer(bf(x), *[bf(p) for p in params]))
    assert jnp.max(jnp.abs(out_bf16.astype(jnp.float32) - ref)) < 1e-1, (
        f"bf16 max abs err = {jnp.max(jnp.abs(out_bf16.astype(jnp.float32) - ref))}")

    # --- k-tiled streaming fallback (forced via tk): d_inner=256, tk=128 -> n_k=2 ---------
    d_inner2 = 256
    x2 = jax.random.normal(kx2, (batch, seq, d_model), dtype=jnp.float32)
    params2 = _make_params(kp2, d_model, d_inner2)
    ref2 = reference(x2, *params2)
    out2 = jax.block_until_ready(mlp_layer(x2, *params2, tk=128))
    assert jnp.allclose(out2, ref2, atol=1e-4, rtol=1e-4), (
        f"tiled f32 max abs err = {jnp.max(jnp.abs(out2 - ref2))}")

    print("KERNEL_OK")
</pallas_src>

<mosaic_0001>
module attributes {stable_mosaic.version = 11 : i64} {
  func.func @mlp_fused_kernel(%arg0: i32, %arg1: memref<16x128xf32, #tpu.memory_space<vmem>>, %arg2: memref<128x128xf32, #tpu.memory_space<vmem>>, %arg3: memref<1x128xf32, #tpu.memory_space<vmem>>, %arg4: memref<128x128xf32, #tpu.memory_space<vmem>>, %arg5: memref<1x128xf32, #tpu.memory_space<vmem>>, %arg6: memref<1x128xf32, #tpu.memory_space<vmem>>, %arg7: memref<1x128xf32, #tpu.memory_space<vmem>>, %arg8: memref<16x128xf32, #tpu.memory_space<vmem>>) attributes {dimension_semantics = [#tpu.dimension_semantics<parallel>], iteration_bounds = array<i64: 1>, scalar_prefetch = 0 : i64, scratch_operands = 0 : i64, tpu.core_type = #tpu.core_type<tc>, window_params = [{transform_indices = @transform_0, window_bounds = array<i64: 16, 128>}, {pipeline_mode = #tpu.pipeline_mode<synchronous>, transform_indices = @transform_1, window_bounds = array<i64: 128, 128>}, {pipeline_mode = #tpu.pipeline_mode<synchronous>, transform_indices = @transform_2, window_bounds = array<i64: 1, 128>}, {pipeline_mode = #tpu.pipeline_mode<synchronous>, transform_indices = @transform_3, window_bounds = array<i64: 128, 128>}, {pipeline_mode = #tpu.pipeline_mode<synchronous>, transform_indices = @transform_4, window_bounds = array<i64: 1, 128>}, {pipeline_mode = #tpu.pipeline_mode<synchronous>, transform_indices = @transform_5, window_bounds = array<i64: 1, 128>}, {pipeline_mode = #tpu.pipeline_mode<synchronous>, transform_indices = @transform_6, window_bounds = array<i64: 1, 128>}, {transform_indices = @transform_7, window_bounds = array<i64: 16, 128>}]} {
    %c0 = arith.constant 0 : index
    %c0_0 = arith.constant 0 : index
    %0 = vector.load %arg1[%c0, %c0_0] : memref<16x128xf32, #tpu.memory_space<vmem>>, vector<16x128xf32>
    %c0_1 = arith.constant 0 : index
    %c0_2 = arith.constant 0 : index
    %1 = vector.load %arg2[%c0_1, %c0_2] : memref<128x128xf32, #tpu.memory_space<vmem>>, vector<128x128xf32>
    %cst = arith.constant dense<0.000000e+00> : vector<16x128xf32>
    %2 = tpu.matmul %0, %1, %cst {dimension_numbers = #tpu.dot_dimension_numbers<[1], [0], [0], [1], [0, 0, 1, 1], [], []>} : vector<16x128xf32>, vector<128x128xf32>, vector<16x128xf32> -> vector<16x128xf32>
    %c0_3 = arith.constant 0 : index
    %c0_4 = arith.constant 0 : index
    %3 = vector.load %arg3[%c0_3, %c0_4] : memref<1x128xf32, #tpu.memory_space<vmem>>, vector<1x128xf32>
    %4 = vector.broadcast %3 : vector<1x128xf32> to vector<16x128xf32>
    %5 = arith.addf %2, %4 : vector<16x128xf32>
    %cst_5 = arith.constant 0.000000e+00 : f32
    %6 = vector.broadcast %cst_5 : f32 to vector<16x128xf32>
    %7 = arith.maximumf %5, %6 : vector<16x128xf32>
    %c0_6 = arith.constant 0 : index
    %c0_7 = arith.constant 0 : index
    %8 = vector.load %arg4[%c0_6, %c0_7] : memref<128x128xf32, #tpu.memory_space<vmem>>, vector<128x128xf32>
    %cst_8 = arith.constant dense<0.000000e+00> : vector<16x128xf32>
    %9 = tpu.matmul %7, %8, %cst_8 {dimension_numbers = #tpu.dot_dimension_numbers<[1], [0], [0], [1], [0, 0, 1, 1], [], []>} : vector<16x128xf32>, vector<128x128xf32>, vector<16x128xf32> -> vector<16x128xf32>
    %c0_9 = arith.constant 0 : index
    %c0_10 = arith.constant 0 : index
    %10 = vector.load %arg5[%c0_9, %c0_10] : memref<1x128xf32, #tpu.memory_space<vmem>>, vector<1x128xf32>
    %11 = vector.broadcast %10 : vector<1x128xf32> to vector<16x128xf32>
    %12 = arith.addf %9, %11 : vector<16x128xf32>
    %13 = arith.addf %12, %0 : vector<16x128xf32>
    %c0_11 = arith.constant 0 : index
    %c0_12 = arith.constant 0 : index
    %14 = vector.load %arg6[%c0_11, %c0_12] : memref<1x128xf32, #tpu.memory_space<vmem>>, vector<1x128xf32>
    %c0_13 = arith.constant 0 : index
    %c0_14 = arith.constant 0 : index
    %15 = vector.load %arg7[%c0_13, %c0_14] : memref<1x128xf32, #tpu.memory_space<vmem>>, vector<1x128xf32>
    %cst_15 = arith.constant dense<0.000000e+00> : vector<16xf32>
    %16 = vector.multi_reduction <add>, %13, %cst_15 [1] : vector<16x128xf32> to vector<16xf32>
    %17 = vector.shape_cast %16 : vector<16xf32> to vector<16x1xf32>
    %cst_16 = arith.constant 3.125000e-02 : f32
    %18 = vector.broadcast %cst_16 : f32 to vector<16x1xf32>
    %19 = arith.mulf %17, %18 : vector<16x1xf32>
    %20 = vector.broadcast %19 : vector<16x1xf32> to vector<16x128xf32>
    %21 = arith.subf %13, %20 : vector<16x128xf32>
    %22 = arith.mulf %21, %21 : vector<16x128xf32>
    %cst_17 = arith.constant dense<0.000000e+00> : vector<16xf32>
    %23 = vector.multi_reduction <add>, %22, %cst_17 [1] : vector<16x128xf32> to vector<16xf32>
    %24 = vector.shape_cast %23 : vector<16xf32> to vector<16x1xf32>
    %25 = arith.mulf %19, %19 : vector<16x1xf32>
    %cst_18 = arith.constant 9.600000e+01 : f32
    %26 = vector.broadcast %cst_18 : f32 to vector<16x1xf32>
    %27 = arith.mulf %26, %25 : vector<16x1xf32>
    %28 = arith.subf %24, %27 : vector<16x1xf32>
    %cst_19 = arith.constant 3.125000e-02 : f32
    %29 = vector.broadcast %cst_19 : f32 to vector<16x1xf32>
    %30 = arith.mulf %28, %29 : vector<16x1xf32>
    %cst_20 = arith.constant 9.99999997E-7 : f32
    %31 = vector.broadcast %cst_20 : f32 to vector<16x1xf32>
    %32 = arith.addf %30, %31 : vector<16x1xf32>
    %33 = math.rsqrt %32 : vector<16x1xf32>
    %34 = vector.broadcast %33 : vector<16x1xf32> to vector<16x128xf32>
    %35 = arith.mulf %21, %34 : vector<16x128xf32>
    %36 = vector.broadcast %14 : vector<1x128xf32> to vector<16x128xf32>
    %37 = arith.mulf %35, %36 : vector<16x128xf32>
    %38 = vector.broadcast %15 : vector<1x128xf32> to vector<16x128xf32>
    %39 = arith.addf %37, %38 : vector<16x128xf32>
    %c0_21 = arith.constant 0 : index
    %c0_22 = arith.constant 0 : index
    %40 = vector.load %arg8[%c0_21, %c0_22] : memref<16x128xf32, #tpu.memory_space<vmem>>, vector<16x128xf32>
    tpu.vector_store %arg8[%c0_21, %c0_22], %39 {strides = array<i32>} : memref<16x128xf32, #tpu.memory_space<vmem>>, vector<16x128xf32>,
    return
  }
  func.func @transform_0(%arg0: i32) -> (i32, i32) {
    %c0_i32 = arith.constant 0 : i32
    %c0_i32_0 = arith.constant 0 : i32
    return %arg0, %c0_i32 : i32, i32
  }
  func.func @transform_1(%arg0: i32) -> (i32, i32) {
    %c0_i32 = arith.constant 0 : i32
    %c0_i32_0 = arith.constant 0 : i32
    %c0_i32_1 = arith.constant 0 : i32
    return %c0_i32, %c0_i32_0 : i32, i32
  }
  func.func @transform_2(%arg0: i32) -> (i32, i32) {
    %c0_i32 = arith.constant 0 : i32
    %c0_i32_0 = arith.constant 0 : i32
    %c0_i32_1 = arith.constant 0 : i32
    return %c0_i32, %c0_i32_0 : i32, i32
  }
  func.func @transform_3(%arg0: i32) -> (i32, i32) {
    %c0_i32 = arith.constant 0 : i32
    %c0_i32_0 = arith.constant 0 : i32
    %c0_i32_1 = arith.constant 0 : i32
    return %c0_i32, %c0_i32_0 : i32, i32
  }
  func.func @transform_4(%arg0: i32) -> (i32, i32) {
    %c0_i32 = arith.constant 0 : i32
    %c0_i32_0 = arith.constant 0 : i32
    %c0_i32_1 = arith.constant 0 : i32
    return %c0_i32, %c0_i32_0 : i32, i32
  }
  func.func @transform_5(%arg0: i32) -> (i32, i32) {
    %c0_i32 = arith.constant 0 : i32
    %c0_i32_0 = arith.constant 0 : i32
    %c0_i32_1 = arith.constant 0 : i32
    return %c0_i32, %c0_i32_0 : i32, i32
  }
  func.func @transform_6(%arg0: i32) -> (i32, i32) {
    %c0_i32 = arith.constant 0 : i32
    %c0_i32_0 = arith.constant 0 : i32
    %c0_i32_1 = arith.constant 0 : i32
    return %c0_i32, %c0_i32_0 : i32, i32
  }
  func.func @transform_7(%arg0: i32) -> (i32, i32) {
    %c0_i32 = arith.constant 0 : i32
    %c0_i32_0 = arith.constant 0 : i32
    return %arg0, %c0_i32 : i32, i32
  }
}

</mosaic_0001>

<bundles_post_ra>
// kernel: tpu_custom_call.1
= control target key start
LH: loop header
LB: loop body
LE: loop exit
PB: predicated region body
PF: predicated region fallthrough
CT: control target
= control target key end

     0   :  { %12 = vsyncpa [#allocation3], 0  ;;  %s743_s0 = inlined_call_operand.hbm [shape: f32[16,128], index: 0, kind: input, shape index: {}]   ;;  %s744_s1 = inlined_call_operand.hbm [shape: f32[128,128], index: 1, kind: input, shape index: {}]   ;;  %s745_s2 = inlined_call_operand.vmem [shape: f32[1,128], index: 2, kind: input, shape index: {}]   ;;  %s746_s3 = inlined_call_operand.hbm [shape: f32[128,128], index: 3, kind: input, shape index: {}]   ;;  %s747_s4 = inlined_call_operand.vmem [shape: f32[1,128], index: 4, kind: input, shape index: {}]   ;;  %s748_s5 = inlined_call_operand.vmem [shape: f32[1,128], index: 5, kind: input, shape index: {}]   ;;  %s749_s6 = inlined_call_operand.vmem [shape: f32[1,128], index: 6, kind: input, shape index: {}]   ;;  %s750_s7 = inlined_call_operand.hbm [shape: f32[16,128], index: 7, kind: output, shape index: {}]  }
   0x1   :  { %13 = vsyncpa [#allocation6], 0 }
   0x2   :  { %14 = vsyncpa [#allocation4], 0  ;;  %s614_s24 = smov [#allocation5]   ;;  %s615_s26 = smov [#allocation2]  }
   0x3   :  { %s32_s25 = sshll.u32 %s614_s24, 4  ;;  %s20_s27 = sshll.u32 %s615_s26, 4  ;;  %s33_s25 = int_to_ptr.vmem [resolvable:$true] %s32_s25  ;;  %s660_s27 = int_to_ptr.vmem [resolvable:$true] %s20_s27 }
   0x4   :  { %s520_s30 = scalar_lea.hbm %s744_s1, 2048 }
   0x5   :  { %p521_p0 = scmp.ne.s32.totalorder %s744_s1, %s520_s30  ;;  %p524_p1 = scmp.lt.u32.totalorder %s520_s30, %s744_s1 }
   0x7   :  { %p526_p2 = pnand %p524_p1, %p521_p0 }
   0x9   :  { %529 = shalt.err (!%p526_p2)
}
   0xa   :  { %s530_s12 = scalar_lea.vmem %s33_s25, 2048  ;;  %p535_p4 = scmp.lt.s32.totalorder %s33_s25, %s33_s25 }
   0xb   :  { %p531_p3 = scmp.ne.s32.totalorder %s33_s25, %s530_s12  ;;  %p536_p5 = scmp.lt.s32.totalorder %s530_s12, %s530_s12 }
   0xd   :  { %p537_p6 = por %p536_p5, %p535_p4 }
   0xf   :  { %p538_p7 = pnand %p537_p6, %p531_p3 }
  0x11   :  { %541 = shalt.err (!%p538_p7)
}
  0x12   :  { %s616_s13 = smov 128   ;;  %s617_s14 = smov 8  }
  0x13   :  { %38 = dma.hbm_to_vmem [thread:$0]  %s744_s1, 2048, %s33_s25, [#allocation6], %s616_s13, %s616_s13, %s617_s14  }
  0x14   :  { %s542_s19 = scalar_lea.hbm %s743_s0, 256 }
  0x15   :  { %p543_p8 = scmp.ne.s32.totalorder %s743_s0, %s542_s19  ;;  %p546_p9 = scmp.lt.u32.totalorder %s542_s19, %s743_s0 }
  0x17   :  { %p548_p10 = pnand %p546_p9, %p543_p8 }
  0x19   :  { %551 = shalt.err (!%p548_p10)
}
  0x1a   :  { %s552_s24 = scalar_lea.vmem %s660_s27, 256  ;;  %p557_p12 = scmp.lt.s32.totalorder %s660_s27, %s660_s27 }
  0x1b   :  { %p553_p11 = scmp.ne.s32.totalorder %s660_s27, %s552_s24  ;;  %p558_p13 = scmp.lt.s32.totalorder %s552_s24, %s552_s24 }
  0x1d   :  { %p559_p0 = por %p558_p13, %p557_p12 }
  0x1f   :  { %p560_p1 = pnand %p559_p0, %p553_p11 }
  0x21   :  { %563 = shalt.err (!%p560_p1)
}
  0x22   :  { %26 = dma.hbm_to_vmem [thread:$0]  %s743_s0, 256, %s660_s27, [#allocation3], %s616_s13, %s616_s13, %s617_s14  }
  0x23   :  { %s618_s26 = smov [#allocation7]   ;;  %s564_s8 = scalar_lea.hbm %s746_s3, 2048 }
  0x24   :  { %s46_s28 = sshll.u32 %s618_s26, 4  ;;  %p565_p2 = scmp.ne.s32.totalorder %s746_s3, %s564_s8  ;;  %s47_s28 = int_to_ptr.vmem [resolvable:$true] %s46_s28 }
  0x25   :  { %p568_p3 = scmp.lt.u32.totalorder %s564_s8, %s746_s3 }
  0x27   :  { %p570_p4 = pnand %p568_p3, %p565_p2 }
  0x29   :  { %573 = shalt.err (!%p570_p4)
}
  0x2a   :  { %s574_s15 = scalar_lea.vmem %s47_s28, 2048  ;;  %p579_p6 = scmp.lt.s32.totalorder %s47_s28, %s47_s28 }
  0x2b   :  { %p575_p5 = scmp.ne.s32.totalorder %s47_s28, %s574_s15  ;;  %p580_p7 = scmp.lt.s32.totalorder %s574_s15, %s574_s15 }
  0x2d   :  { %p581_p8 = por %p580_p7, %p579_p6 }
  0x2f   :  { %p582_p9 = pnand %p581_p8, %p575_p5 }
  0x31   :  { %585 = shalt.err (!%p582_p9)
}
  0x32   :  { %52 = dma.hbm_to_vmem [thread:$0]  %s746_s3, 2048, %s47_s28, [#allocation6], %s616_s13, %s616_s13, %s617_s14  }
  0x33   :  { %608 = dma.done.wait [#allocation3], 256  }
  0x34   :  { %609 = vsyncadd [#allocation3], 4294967040 }
  0x35   :  { %610 = dma.done.wait [#allocation6], 4096  }
  0x36   :  { %611 = vsyncadd [#allocation6], 4294963200  ;;  %v70_v0 = vld [vmem:[#allocation5] sm:$0xff]  ;;  %v71_v1 = vld [vmem:[#allocation5 + $0x8] sm:$0xff]  ;;  %s619_s21 = smov [#allocation8]  }
  0x37   :  { %v72_v2 = vld [vmem:[#allocation5 + $0x10] sm:$0xff]  ;;  %v446_v3 = vpack.c.bf16 %v71_v1, %v70_v0  ;;  %v73_v4 = vld [vmem:[#allocation5 + $0x18] sm:$0xff]  ;;  %v74_v6 = vld [vmem:[#allocation5 + $0x20] sm:$0xff]  ;;  %s323_s22 = sshll.u32 %s619_s21, 4  ;;  %s324_s22 = int_to_ptr.vmem [resolvable:$true] %s323_s22 }
  0x38   :  { %v450_v5 = vpack.c.bf16 %v73_v4, %v72_v2  ;;  %v75_v7 = vld [vmem:[#allocation5 + $0x28] sm:$0xff]  ;;  %v76_v9 = vld [vmem:[#allocation5 + $0x30] sm:$0xff]  ;;  %v77_v10 = vld [vmem:[#allocation5 + $0x38] sm:$0xff]  ;;  %s586_s23 = scalar_lea.vmem %s324_s22, 256  ;;  %p591_p11 = scmp.lt.s32.totalorder %s324_s22, %s324_s22 }
  0x39   :  { %447 = vmatprep.subr.bf16.mxu0 %v446_v3  ;;  %v454_v8 = vpack.c.bf16 %v75_v7, %v74_v6  ;;  %v712_v11 = vld [vmem:[#allocation2] sm:$0xff]  ;;  %v170_v12 = vld [vmem:[#allocation7] sm:$0xff]  ;;  %v171_v13 = vld [vmem:[#allocation7 + $0x8] sm:$0xff]  ;;  %v458_v20 = vpack.c.bf16 %v77_v10, %v76_v9  ;;  %p587_p10 = scmp.ne.s32.totalorder %s324_s22, %s586_s23  ;;  %p592_p12 = scmp.lt.s32.totalorder %s586_s23, %s586_s23 }
  0x3a   :  { %449 = vmatpush3.bf16.msra.mxu0 %v446_v3  ;;  %408 = vmatprep.mubr.f32.mxu0 %v712_v11  ;;  %v172_v14 = vld [vmem:[#allocation7 + $0x10] sm:$0xff]  ;;  %v478_v15 = vpack.c.bf16 %v171_v13, %v170_v12  ;;  %v173_v16 = vld [vmem:[#allocation7 + $0x18] sm:$0xff]  ;;  %v174_v18 = vld [vmem:[#allocation7 + $0x20] sm:$0xff] }
  0x3b   :  { %451 = vmatprep.subr.bf16.mxu0 %v450_v5  ;;  %v482_v17 = vpack.c.bf16 %v173_v16, %v172_v14  ;;  %v175_v19 = vld [vmem:[#allocation7 + $0x28] sm:$0xff]  ;;  %v78_v21 = vld [vmem:[#allocation5 + $0x40] sm:$0xff]  ;;  %v176_v24 = vld [vmem:[#allocation7 + $0x30] sm:$0xff]  ;;  %p593_p13 = por %p592_p12, %p591_p11 }
  0x3c   :  { %479 = vmatprep.subr.bf16.mxu1 %v478_v15  ;;  %v79_v22 = vld [vmem:[#allocation5 + $0x48] sm:$0xff]  ;;  %v486_v23 = vpack.c.bf16 %v175_v19, %v174_v18  ;;  %v177_v25 = vld [vmem:[#allocation7 + $0x38] sm:$0xff]  ;;  %v80_v27 = vld [vmem:[#allocation5 + $0x50] sm:$0xff] }
  0x3d   :  { %481 = vmatpush3.bf16.msra.mxu1 %v478_v15  ;;  %v462_v26 = vpack.c.bf16 %v79_v22, %v78_v21  ;;  %v81_v28 = vld [vmem:[#allocation5 + $0x58] sm:$0xff]  ;;  %v490_v29 = vpack.c.bf16 %v177_v25, %v176_v24  ;;  %v178_v30 = vld [vmem:[#allocation7 + $0x40] sm:$0xff]  ;;  %v179_v31 = vld [vmem:[#allocation7 + $0x48] sm:$0xff]  ;;  %p594_p0 = pnand %p593_p13, %p587_p10 }
  0x3e   :  { %453 = vmatpush3.bf16.msra.mxu0 %v450_v5  ;;  %483 = vmatprep.subr.bf16.mxu1 %v482_v17  ;;  %v466_v32 = vpack.c.bf16 %v81_v28, %v80_v27  ;;  %v82_v33 = vld [vmem:[#allocation5 + $0x60] sm:$0xff]  ;;  %v83_v34 = vld [vmem:[#allocation5 + $0x68] sm:$0xff]  ;;  %v494_v35 = vpack.c.bf16 %v179_v31, %v178_v30  ;;  %v180_v36 = vld [vmem:[#allocation7 + $0x50] sm:$0xff] }
  0x3f   :  { %455 = vmatprep.subr.bf16.mxu0 %v454_v8  ;;  %v181_v37 = vld [vmem:[#allocation7 + $0x58] sm:$0xff]  ;;  %v470_v38 = vpack.c.bf16 %v83_v34, %v82_v33  ;;  %v84_v39 = vld [vmem:[#allocation5 + $0x70] sm:$0xff]  ;;  %v182_v42 = vld [vmem:[#allocation7 + $0x60] sm:$0xff] }
  0x40   :  { %v85_v40 = vld [vmem:[#allocation5 + $0x78] sm:$0xff]  ;;  %v498_v41 = vpack.c.bf16 %v181_v37, %v180_v36  ;;  %v183_v43 = vld [vmem:[#allocation7 + $0x68] sm:$0xff]  ;;  %v184_v47 = vld [vmem:[#allocation7 + $0x70] sm:$0xff] }
  0x41   :  { %485 = vmatpush3.bf16.msra.mxu1 %v482_v17  ;;  %v474_v44 = vpack.c.bf16 %v85_v40, %v84_v39  ;;  %v502_v45 = vpack.c.bf16 %v183_v43, %v182_v42  ;;  %v69_v46 = vld [vmem:[#allocation2 + $0x8] sm:$0xff]  ;;  %v336_v50 = vld [vmem:[%s745_s2] ss:$0 sm:$0xff] }
  0x42   :  { %457 = vmatpush3.bf16.msra.mxu0 %v454_v8  ;;  %487 = vmatprep.subr.bf16.mxu1 %v486_v23  ;;  %v185_v48 = vld [vmem:[#allocation7 + $0x78] sm:$0xff]  ;;  %v337_v57 = vld [vmem:[%s747_s4] ss:$0 sm:$0xff] }
  0x43   :  { %459 = vmatprep.subr.bf16.mxu0 %v458_v20  ;;  %v506_v49 = vpack.c.bf16 %v185_v48, %v184_v47  ;;  %v338_v21 = vld [vmem:[%s748_s5] ss:$0 sm:$0xff] }
  0x45   :  { %489 = vmatpush3.bf16.msra.mxu1 %v486_v23  ;;  %v339_v23 = vld [vmem:[%s749_s6] ss:$0 sm:$0xff] }
  0x46   :  { %461 = vmatpush3.bf16.msra.mxu0 %v458_v20  ;;  %491 = vmatprep.subr.bf16.mxu1 %v490_v29 }
  0x47   :  { %463 = vmatprep.subr.bf16.mxu0 %v462_v26 }
  0x49   :  { %493 = vmatpush3.bf16.msra.mxu1 %v490_v29 }
  0x4a   :  { %465 = vmatpush3.bf16.msra.mxu0 %v462_v26  ;;  %495 = vmatprep.subr.bf16.mxu1 %v494_v35 }
  0x4b   :  { %467 = vmatprep.subr.bf16.mxu0 %v466_v32 }
  0x4d   :  { %497 = vmatpush3.bf16.msra.mxu1 %v494_v35 }
  0x4e   :  { %469 = vmatpush3.bf16.msra.mxu0 %v466_v32  ;;  %499 = vmatprep.subr.bf16.mxu1 %v498_v41 }
  0x4f   :  { %471 = vmatprep.subr.bf16.mxu0 %v470_v38 }
  0x51   :  { %501 = vmatpush3.bf16.msra.mxu1 %v498_v41 }
  0x52   :  { %473 = vmatpush3.bf16.msra.mxu0 %v470_v38  ;;  %503 = vmatprep.subr.bf16.mxu1 %v502_v45 }
  0x53   :  { %475 = vmatprep.subr.bf16.mxu0 %v474_v44 }
  0x55   :  { %505 = vmatpush3.bf16.msra.mxu1 %v502_v45 }
  0x56   :  { %477 = vmatpush3.bf16.msra.mxu0 %v474_v44  ;;  %507 = vmatprep.subr.bf16.mxu1 %v506_v49 }
  0x59   :  { %409 = vmatmul.mubr.f32.vlgmr.msra.gmra.mrb[0].mxu0 %v69_v46  ;;  %509 = vmatpush3.bf16.msra.mxu1 %v506_v49 }
 0x12c   :  { %v410_v51 = vpop.f32.mrb[0].mxu0 }
 0x12d   :  { %v165_v52 = vadd.f32 %v410_v51, %v336_v50  ;;  %v159_v53 = vpop.f32.mrb[1].mxu0 }
 0x12e   :  { %v160_v54 = vadd.f32 %v336_v50, %v159_v53 }
 0x12f   :  { %v169_v56 = vmax.f32 %v165_v52, 0.0 }
 0x130   :  { %v168_v55 = vmax.f32 %v160_v54, 0.0 }
 0x132   :  { %443 = vmatprep.mubr.f32.mxu1 %v168_v55 }
 0x133   :  { %444 = vmatmul.mubr.f32.vlgmr.msra.gmra.mrb[0].mxu1 %v169_v56 }
 0x206   :  { %v445_v58 = vpop.f32.mrb[0].mxu1 }
 0x207   :  { %v259_v59 = vpop.f32.mrb[1].mxu1  ;;  %v265_v61 = vadd.f32 %v445_v58, %v337_v57 }
 0x208   :  { %v260_v60 = vadd.f32 %v337_v57, %v259_v59 }
 0x209   :  { %v269_v63 = vadd.f32 %v265_v61, %v69_v46 }
 0x20a   :  { %v268_v62 = vadd.f32 %v260_v60, %v712_v11 }
 0x20c   :  { %272 = vadd.xlane.f32.xlu0 %v268_v62 }
 0x210   :  { %274 = vadd.xlane.f32.xlu0 %v269_v63 }
 0x299   :  { %v273_v0 = vpop.xlane.xlu0 %272 }
 0x29a   :  { %v276_v1 = vmul.f32 0.03125, %v273_v0 }
 0x29c   :  { %v278_v2 = vsub.f32 %v268_v62, %v276_v1  ;;  %v286_v8 = vmul.f32 %v276_v1, %v276_v1 }
 0x29d   :  { %v275_v3 = vpop.xlane.xlu0 %274 }
 0x29e   :  { %v277_v4 = vmul.f32 0.03125, %v275_v3  ;;  %v280_v5 = vmul.f32 %v278_v2, %v278_v2  ;;  %v288_v10 = vmul.f32 96.0, %v286_v8 }
 0x2a0   :  { %v279_v6 = vsub.f32 %v269_v63, %v277_v4  ;;  %282 = vadd.xlane.f32.xlu1 %v280_v5  ;;  %v287_v9 = vmul.f32 %v277_v4, %v277_v4 }
 0x2a2   :  { %v281_v7 = vmul.f32 %v279_v6, %v279_v6  ;;  %v289_v14 = vmul.f32 96.0, %v287_v9 }
 0x2a4   :  { %284 = vadd.xlane.f32.xlu1 %v281_v7 }
 0x32d   :  { %v283_v12 = vpop.xlane.xlu1 %282 }
 0x32e   :  { %v290_v13 = vsub.f32 %v283_v12, %v288_v10 }
 0x330   :  { %v292_v11 = vmul.f32 0.03125, %v290_v13 }
 0x331   :  { %v285_v15 = vpop.xlane.xlu1 %284 }
 0x332   :  { %v294_v16 = vadd.f32 1e-06, %v292_v11  ;;  %v291_v17 = vsub.f32 %v285_v15, %v289_v14 }
 0x334   :  { %516 = vrsqrt.f32 %v294_v16  ;;  %v293_v18 = vmul.f32 0.03125, %v291_v17 }
 0x336   :  { %v295_v19 = vadd.f32 1e-06, %v293_v18 }
 0x338   :  { %518 = vrsqrt.f32 %v295_v19 }
 0x33e   :  { %v517_v20 = vpop.eup %516 }
 0x33f   :  { %v298_v22 = vmul.f32 %v517_v20, %v278_v2 }
 0x341   :  { %v306_v24 = vmul.f32 %v338_v21, %v298_v22 }
 0x342   :  { %v519_v25 = vpop.eup %518 }
 0x343   :  { %v299_v26 = vmul.f32 %v519_v25, %v279_v6  ;;  %v314_v27 = vadd.f32 %v339_v23, %v306_v24 }
 0x345   :  { %v307_v28 = vmul.f32 %v338_v21, %v299_v26  ;;  %316 = vst [vmem:[#allocation8] sm:$0xff] %v314_v27 }
 0x347   :  { %v315_v29 = vadd.f32 %v339_v23, %v307_v28 }
 0x349   :  { %317 = vst [vmem:[#allocation8 + $0x8] sm:$0xff] %v315_v29 }
 0x34a   :  { %597 = shalt.err (!%p594_p0)
}
 0x34b   :  { %s598_s24 = scalar_lea.hbm %s750_s7, 256 }
 0x34c   :  { %p599_p1 = scmp.ne.s32.totalorder %s750_s7, %s598_s24  ;;  %p602_p2 = scmp.lt.u32.totalorder %s598_s24, %s750_s7 }
 0x34e   :  { %p604_p3 = pnand %p602_p2, %p599_p1 }
 0x350   :  { %607 = shalt.err (!%p604_p3)
}
 0x351   :  { %329 = dma.vmem_to_hbm [thread:$0]  %s324_s22, 256, %s750_s7, [#allocation4], %s616_s13, %s616_s13, %s617_s14  }
 0x352   :  { %612 = dma.done.wait [#allocation4], 256  }
 0x353   :  { %613 = vsyncadd [#allocation4], 4294967040 }
 0x354   :  { %333 = vsyncpa [#allocation3], 1 }
 0x355   :  { %334 = vsyncpa [#allocation6], 1 }
 0x356   :  { %335 = vsyncpa [#allocation4], 1 }

</bundles_post_ra>
